<compile_context>
chip_gen: v5e
topology: v5e:2x2
jax: 0.10.0
libtpu: 0.0.40
codegen_flags: <defaults>
</compile_context>

<pallas_src>
import jax
import jax.numpy as jnp
from jax.experimental import pallas as pl
from jax.experimental.pallas import tpu as pltpu


def _round_up(x, m):
    return ((x + m - 1) // m) * m


def patch_embed_kernel(p_ref, w_ref, b_ref, o_ref):
    # p_ref: (tm, K) bf16   w_ref: (K, E_pad) bf16   b_ref: (1, E_pad) f32
    acc = jnp.dot(p_ref[...], w_ref[...], preferred_element_type=jnp.float32)
    o_ref[...] = (acc + b_ref[...]).astype(o_ref.dtype)


def patch_embed(x, weight, bias, patch_size, *, use_bf16=True, max_row_tile=256):
    """PatchEmbed forward.

    x:      (B, Cin, H, W) float32
    weight: (E, Cin, p, p) conv weight (torch OIHW layout)
    bias:   (E,)           conv bias
    returns (B, num_patches, E) float32 with num_patches = (H//p)*(W//p)
    """
    B, Cin, H, W = x.shape
    p = patch_size
    assert H % p == 0 and W % p == 0, "Input image size doesn't match model"
    Hp, Wp = H // p, W // p
    NP = Hp * Wp
    E = weight.shape[0]
    K = Cin * p * p
    M = B * NP

    # --- im2col in the wrapper (layout plumbing; the conv's compute is the GEMM)
    patches = x.reshape(B, Cin, Hp, p, Wp, p)
    patches = patches.transpose(0, 2, 4, 1, 3, 5).reshape(M, K)      # (M, K)
    w2d = weight.reshape(E, K).T                                     # (K, E)
    b2d = bias.reshape(1, E).astype(jnp.float32)

    # --- lane-dense output: pad embed dim up to a multiple of 128
    E_pad = _round_up(E, 128)
    if E_pad != E:
        w2d = jnp.pad(w2d, ((0, 0), (0, E_pad - E)))
        b2d = jnp.pad(b2d, ((0, 0), (0, E_pad - E)))

    # --- row tile: multiple of 8; small problems split into >=2 parallel steps
    m8 = _round_up(M, 8)
    if m8 > max_row_tile:
        tm = max_row_tile
    elif m8 >= 16:
        tm = _round_up(-(-M // 2), 8)      # ~2 grid steps (v7x megacore)
    else:
        tm = m8
    M_pad = _round_up(M, tm)
    if M_pad != M:
        patches = jnp.pad(patches, ((0, M_pad - M), (0, 0)))

    comp_dtype = jnp.bfloat16 if use_bf16 else patches.dtype
    patches_c = patches.astype(comp_dtype)
    w_c = w2d.astype(comp_dtype)

    out = pl.pallas_call(
        patch_embed_kernel,
        out_shape=jax.ShapeDtypeStruct((M_pad, E_pad), jnp.float32),
        grid=(M_pad // tm,),
        in_specs=[
            pl.BlockSpec((tm, K), lambda i: (i, 0)),       # patch rows (pipelined)
            pl.BlockSpec((K, E_pad), lambda i: (0, 0)),    # weight (resident)
            pl.BlockSpec((1, E_pad), lambda i: (0, 0)),    # bias   (resident)
        ],
        out_specs=pl.BlockSpec((tm, E_pad), lambda i: (i, 0)),
        compiler_params=pltpu.CompilerParams(
            dimension_semantics=("parallel",),
            vmem_limit_bytes=32 * 1024 * 1024,
        ),
    )(patches_c, w_c, b2d)

    return out[:M, :E].reshape(B, NP, E)


if __name__ == "__main__":
    # small deterministic example: B=2, in_chans=4, img=16x16, patch=4, embed=32
    B, Cin, H, W = 2, 4, 16, 16
    patch = 4
    E = 32

    key = jax.random.PRNGKey(0)
    kx, kw, kb = jax.random.split(key, 3)
    x = jax.random.normal(kx, (B, Cin, H, W), dtype=jnp.float32)
    weight = (0.02 * jax.random.normal(kw, (E, Cin, patch, patch))).astype(jnp.float32)
    bias = (0.02 * jax.random.normal(kb, (E,))).astype(jnp.float32)

    out = patch_embed(x, weight, bias, patch)
    jax.block_until_ready(out)

    NP = (H // patch) * (W // patch)
    assert out.shape == (B, NP, E) and out.dtype == jnp.float32

    # exact-f32 reference conv; kernel uses bf16 MXU operands -> small, bounded drift
    ref = jax.lax.conv_general_dilated(
        x, weight, window_strides=(patch, patch), padding="VALID",
        dimension_numbers=("NCHW", "OIHW", "NCHW"),
        precision=jax.lax.Precision.HIGHEST)                 # (B, E, Hp, Wp)
    ref = ref.reshape(B, E, NP).transpose(0, 2, 1) + bias.reshape(1, 1, E)
    assert jnp.max(jnp.abs(out - ref)) < 1e-2

    print("KERNEL_OK")
</pallas_src>

<mosaic_0001>
module attributes {stable_mosaic.version = 11 : i64} {
  func.func @patch_embed_kernel(%arg0: i32, %arg1: memref<16x64xbf16, #tpu.memory_space<vmem>>, %arg2: memref<64x128xbf16, #tpu.memory_space<vmem>>, %arg3: memref<1x128xf32, #tpu.memory_space<vmem>>, %arg4: memref<16x128xf32, #tpu.memory_space<vmem>>) attributes {dimension_semantics = [#tpu.dimension_semantics<parallel>], iteration_bounds = array<i64: 2>, scalar_prefetch = 0 : i64, scratch_operands = 0 : i64, tpu.core_type = #tpu.core_type<tc>, window_params = [{transform_indices = @transform_0, window_bounds = array<i64: 16, 64>}, {pipeline_mode = #tpu.pipeline_mode<synchronous>, transform_indices = @transform_1, window_bounds = array<i64: 64, 128>}, {pipeline_mode = #tpu.pipeline_mode<synchronous>, transform_indices = @transform_2, window_bounds = array<i64: 1, 128>}, {transform_indices = @transform_3, window_bounds = array<i64: 16, 128>}]} {
    %c0 = arith.constant 0 : index
    %c0_0 = arith.constant 0 : index
    %0 = vector.load %arg1[%c0, %c0_0] : memref<16x64xbf16, #tpu.memory_space<vmem>>, vector<16x64xbf16>
    %c0_1 = arith.constant 0 : index
    %c0_2 = arith.constant 0 : index
    %1 = vector.load %arg2[%c0_1, %c0_2] : memref<64x128xbf16, #tpu.memory_space<vmem>>, vector<64x128xbf16>
    %cst = arith.constant dense<0.000000e+00> : vector<16x128xf32>
    %2 = tpu.matmul %0, %1, %cst {dimension_numbers = #tpu.dot_dimension_numbers<[1], [0], [0], [1], [0, 0, 1, 1], [], []>} : vector<16x64xbf16>, vector<64x128xbf16>, vector<16x128xf32> -> vector<16x128xf32>
    %c0_3 = arith.constant 0 : index
    %c0_4 = arith.constant 0 : index
    %3 = vector.load %arg3[%c0_3, %c0_4] : memref<1x128xf32, #tpu.memory_space<vmem>>, vector<1x128xf32>
    %4 = vector.broadcast %3 : vector<1x128xf32> to vector<16x128xf32>
    %5 = arith.addf %2, %4 : vector<16x128xf32>
    %c0_5 = arith.constant 0 : index
    %c0_6 = arith.constant 0 : index
    %6 = vector.load %arg4[%c0_5, %c0_6] : memref<16x128xf32, #tpu.memory_space<vmem>>, vector<16x128xf32>
    tpu.vector_store %arg4[%c0_5, %c0_6], %5 {strides = array<i32>} : memref<16x128xf32, #tpu.memory_space<vmem>>, vector<16x128xf32>,
    return
  }
  func.func @transform_0(%arg0: i32) -> (i32, i32) {
    %c0_i32 = arith.constant 0 : i32
    %c0_i32_0 = arith.constant 0 : i32
    return %arg0, %c0_i32 : i32, i32
  }
  func.func @transform_1(%arg0: i32) -> (i32, i32) {
    %c0_i32 = arith.constant 0 : i32
    %c0_i32_0 = arith.constant 0 : i32
    %c0_i32_1 = arith.constant 0 : i32
    return %c0_i32, %c0_i32_0 : i32, i32
  }
  func.func @transform_2(%arg0: i32) -> (i32, i32) {
    %c0_i32 = arith.constant 0 : i32
    %c0_i32_0 = arith.constant 0 : i32
    %c0_i32_1 = arith.constant 0 : i32
    return %c0_i32, %c0_i32_0 : i32, i32
  }
  func.func @transform_3(%arg0: i32) -> (i32, i32) {
    %c0_i32 = arith.constant 0 : i32
    %c0_i32_0 = arith.constant 0 : i32
    return %arg0, %c0_i32 : i32, i32
  }
}

</mosaic_0001>

<bundles_post_ra>
// kernel: tpu_custom_call.1
= control target key start
LH: loop header
LB: loop body
LE: loop exit
PB: predicated region body
PF: predicated region fallthrough
CT: control target
= control target key end

     0   :  { %8 = vsyncpa [#allocation3], 0  ;;  %s784_s0 = inlined_call_operand.hbm [shape: bf16[32,64], index: 0, kind: input, shape index: {}]   ;;  %s785_s1 = inlined_call_operand.hbm [shape: bf16[64,128], index: 1, kind: input, shape index: {}]   ;;  %s786_s2 = inlined_call_operand.vmem [shape: f32[1,128], index: 2, kind: input, shape index: {}]   ;;  %s787_s3 = inlined_call_operand.hbm [shape: f32[32,128], index: 3, kind: output, shape index: {}]  }
   0x1   :  { %10 = vsyncpa [#allocation3 + $0x1], 0 }
   0x2   :  { %11 = vsyncpa [#allocation6], 0 }
   0x3   :  { %12 = vsyncpa [#allocation4], 0 }
   0x4   :  { %14 = vsyncpa [#allocation4 + $0x1], 0  ;;  %s636_s12 = smov 0   ;;  %s638_s13 = smov 0  }
   0x5   :  { %s640_s14 = smov 0   ;;  %s642_s15 = smov 0  }
   0x6 LB: > { %s657_s16 = sadd.s32 4294967295, %s609_s15   ;;  %s373_s17 = sadd.s32 4294967294, %s609_s15   ;;  %s609_s15 = sphi %s642_s15, %s797_s15   ;;  %s605_s14 = sphi %s640_s14, %s796_s14   ;;  %s601_s13 = sphi %s638_s13, %s795_s13   ;;  %s597_s12 = sphi %s636_s12, %s794_s12  }
   0x7   : > { %p40_p0 = scmp.ne.s32.totalorder %s601_s13, %s597_s12  ;;  %p41_p1 = scmp.eq.s32.totalorder %s657_s16, 0 }
   0x8   : > { %p106_p2 = scmp.eq.s32.totalorder %s657_s16, 1  ;;  %p112_p3 = scmp.eq.s32.totalorder %s373_s17, 1 }
   0x9   : > { %p666_p4 = por %p41_p1, %p40_p0  ;;  %p374_p5 = scmp.ge.s32.totalorder %s609_s15, 1 }
   0xa   : > { %p671_p6 = por %p112_p3, %p40_p0  ;;  %p119_p7 = scmp.lt.s32.totalorder %s609_s15, 3 }
   0xb   : > { %s130_s22 = sshll.u32 %s785_s1, 4  ;;  %s611_s24 = smov [#allocation5]   ;;  %s131_s22 = int_to_ptr.hbm [resolvable:$true] %s130_s22 }
   0xc   : > { %p679_p8 = pnand %p374_p5, %p119_p7  ;;  %s132_s25 = sshll.u32 %s611_s24, 4  ;;  %s133_s25 = int_to_ptr.vmem [resolvable:$true] %s132_s25 }
   0xd   : > { %s689_s26 = sadd.s32 1, %s609_s15   ;;  %s612_s27 = smov 64  }
   0xe   : > { %p425_p9 = pneg %p679_p8  ;;  %s613_s28 = smov 4  }
   0xf   : > { %s24_s29 = ssub.s32 %s609_s15, %s689_s26  ;;  %s27_s30 = sadd.s32 1, %s605_s14 }
  0x10   : > { %p426_p10 = pnand %p425_p9, %p41_p1  ;;  %p25_p12 = scmp.eq.s32.totalorder %s24_s29, 0 }
  0x11   : > { %p34_p13 = scmp.ne.s32.totalorder %s605_s14, %s601_s13  ;;  %p35_p0 = scmp.eq.s32.totalorder %s609_s15, 0 }
  0x12   : > { %428 = dma.hbm_to_vmem [thread:$0]  (!%p426_p10), %s131_s22, 512, %s133_s25, [#allocation6], %s612_s27, %s612_s27, %s613_s28  }
  0x13   : > { %s701_s4 = scalar_select %p25_p12, %s605_s14, %s27_s30  }
  0x14   : > { %p705_p3 = por %p106_p2, %p34_p13  ;;  %p438_p5 = scmp.lt.s32.totalorder %s609_s15, 2 }
  0x15   : > { %s149_s6 = sand.u32 1, %s605_s14   ;;  %s410_s7 = sshll.u32 %s609_s15, 3 }
  0x16   : > { %p36_p7 = por %p35_p0, %p34_p13  ;;  %s377_s8 = sshll.u32 %s149_s6, 3 }
  0x17   : > { %s158_s11 = scalar_lea.hbm %s784_s0, %s410_s7  ;;  %s153_s20 = scalar_lea.vmem [#allocation2], %s377_s8 }
  0x18   : > { %s159_s17 = sshll.u32 %s158_s11, 4  ;;  %s161_s21 = sshll.u32 %s153_s20, 4  ;;  %s160_s17 = int_to_ptr.hbm [resolvable:$true] %s159_s17  ;;  %s162_s21 = int_to_ptr.vmem [resolvable:$true] %s161_s21 }
  0x19   : > { %p715_p9 = pnand %p438_p5, %p36_p7  ;;  %s150_s24 = scalar_lea.sflag [#allocation3], %s149_s6 }
  0x1a   : > { %s509_s25 = sshra.s32 %s160_s17, 4  ;;  %s516_s8 = scalar_lea.hbm %s784_s0, 16  ;;  %s510_s25 = int_to_ptr.hbm [resolvable:$true] %s509_s25 }
  0x1b   : > { %s511_s29 = scalar_lea.hbm %s510_s25, 8  ;;  %p513_p10 = pneg %p715_p9 }
  0x1c   : > { %p512_p2 = scmp.ne.s32.totalorder %s510_s25, %s511_s29  ;;  %p517_p0 = scmp.lt.s32.totalorder %s510_s25, %s784_s0 }
  0x1d   : > { %p518_p5 = scmp.lt.s32.totalorder %s516_s8, %s511_s29 }
  0x1e   : > { %p514_p12 = pnand %p513_p10, %p512_p2 }
  0x1f   : > { %p519_p7 = por %p518_p5, %p517_p0 }
  0x20   : > { %p515_p13 = pneg %p514_p12 }
  0x22   : > { %p520_p11 = pnand %p519_p7, %p515_p13 }
  0x24   : > { %523 = shalt.err (!%p520_p11)
}
  0x25   : > { %432 = dma.hbm_to_vmem [thread:$0]  (!%p715_p9), %s160_s17, 128, %s162_s21, %s150_s24, %s612_s27, %s612_s27, %s613_s28  }
  0x26   : > { %173 = sbr.rel (%p679_p8) target bundleno = 202 (0xca), region = 32  ;;  %s735_s6 = sand.u32 (!%p679_p8), 1, %s601_s13  }
  0x27   : > { %s381_s11 = sshll.u32 (!%p679_p8), %s735_s6, 3  ;;  %s176_s20 = scalar_lea.sflag (!%p679_p8), [#allocation3], %s735_s6 }
  0x28   : > { %s179_s25 = scalar_lea.vmem (!%p679_p8), [#allocation2], %s381_s11 }
  0x2b   : > { %584 = dma.done.wait (%p666_p4), %s176_s20, 128  }
  0x2c   : > { %586 = vsyncadd (%p666_p4), %s176_s20, 4294967168 }
  0x2d   : > { %588 = dma.done.wait (%p41_p1), [#allocation6], 512  }
  0x2e   : > { %590 = vsyncadd (%p41_p1), [#allocation6], 4294966784  ;;  %v415_v0 = vld [vmem:[#allocation5 + $0x18] sm:$0xff]  ;;  %v414_v1 = vld [vmem:[#allocation5 + $0x10] sm:$0xff]  ;;  %vm254_vm0 = vcmask 523264   ;;  %s383_s18 = sshll.u32 %s735_s6, 4 }
  0x2f   : > { %262 = vmatpush.bf16.msra.mxu0 %v415_v0  ;;  %v413_v2 = vld [vmem:[#allocation5 + $0x8] sm:$0xff]  ;;  %v412_v3 = vld [vmem:[#allocation5] sm:$0xff]  ;;  %v411_v4 = vld [vmem:[%s179_s25] sm:$0xff]  ;;  %s416_s28 = sshll.u32 %s657_s16, 4  ;;  %s207_s24 = scalar_lea.vmem [#allocation7], %s383_s18 }
  0x30   : > { %v478_v5 = vld [vmem:[%s786_s2] ss:$0 sm:$0xff]  ;;  %s286_s22 = scalar_lea.hbm %s787_s3, %s416_s28  ;;  %s287_s29 = sshll.u32 %s207_s24, 4  ;;  %s288_s29 = int_to_ptr.vmem [resolvable:$true] %s287_s29 }
  0x31   : > { %s289_s30 = sshll.u32 %s286_s22, 4  ;;  %s275_s7 = scalar_lea.sflag [#allocation4], %s735_s6  ;;  %s290_s30 = int_to_ptr.hbm [resolvable:$true] %s289_s30 }
  0x32   : > { %s553_s8 = sshra.s32 %s290_s30, 4  ;;  %s559_s11 = scalar_lea.hbm %s787_s3, 32  ;;  %s554_s8 = int_to_ptr.hbm [resolvable:$true] %s553_s8 }
  0x33   : > { %263 = vmatpush.bf16.msra.mxu0 %v414_v1  ;;  %s555_s16 = scalar_lea.hbm %s554_s8, 16  ;;  %p560_p11 = scmp.lt.s32.totalorder %s554_s8, %s787_s3 }
  0x34   : > { %p556_p1 = scmp.ne.s32.totalorder %s554_s8, %s555_s16  ;;  %p561_p9 = scmp.lt.s32.totalorder %s559_s11, %s555_s16 }
  0x36   : > { %p557_p4 = pnand %p556_p1, %p705_p3  ;;  %p562_p2 = por %p561_p9, %p560_p11 }
  0x37   : > { %264 = vmatpush.bf16.msra.mxu0 %v413_v2 }
  0x38   : > { %p558_p8 = pneg %p557_p4 }
  0x3a   : > { %p563_p10 = pnand %p562_p2, %p558_p8 }
  0x3b   : > { %265 = vmatpush.bf16.msra.mxu0 %v412_v3 }
  0x3e   : > { %404 = vmatmul.msk.bf16.vlgmr.msra.gmra.mxu0 %vm254_vm0, %v411_v4 }
  0xbb   : > { %v267_v6 = vpop.f32.mrf.mxu0 }
  0xbc   : > { %v268_v7 = vadd.f32 %v478_v5, %v267_v6 }
  0xbe   : > { %272 = vst [vmem:[%s207_s24] sm:$0xff] %v268_v7 }
  0xc3   : > { %v269_v8 = vpop.f32.mrf.mxu0 }
  0xc4   : > { %v270_v9 = vadd.f32 %v478_v5, %v269_v8 }
  0xc6   : > { %273 = vst [vmem:[%s207_s24 + $0x8] sm:$0xff] %v270_v9 }
  0xc7   : > { %566 = shalt.err (!%p563_p10)
}
  0xc8   : > { %s614_s6 = smov 128   ;;  %s615_s18 = smov 8  }
  0xc9   : > { %423 = dma.vmem_to_hbm [thread:$0]  (%p705_p3), %s288_s29, 256, %s290_s30, %s275_s7, %s614_s6, %s614_s6, %s615_s18  }
  0xca PF: > { %s304_s23 = sand.u32 1, %s597_s12   ;;  %p793_p12 = scmp.ge.s32.totalorder %s609_s15, 2 }
  0xcb   : > { %s305_s27 = scalar_lea.sflag [#allocation4], %s304_s23 }
  0xcc   : > { %p434_p13 = pnand %p793_p12, %p671_p6 }
  0xce   : > { %p435_p0 = pneg %p434_p13 }
  0xd0   : > { %592 = dma.done.wait (%p435_p0), %s305_s27, 256  }
  0xd1   : > { %594 = vsyncadd (%p435_p0), %s305_s27, 4294967040  ;;  %p17_p5 = scmp.ge.s32.totalorder %s689_s26, 4   ;;  %s794_s12 = smov %s601_s13 }
  0xd2   : > { %s795_s13 = smov %s605_s14  ;;  %s796_s14 = smov %s701_s4 }
  0xd3   : > { %s797_s15 = smov %s689_s26  ;;  %19 = sbr.rel (!%p17_p5) target bundleno = 6 (0x6), region = 81 }
  0xd8   :  { %311 = vsyncpa [#allocation3], 1 }
  0xd9   :  { %313 = vsyncpa [#allocation3 + $0x1], 1 }
  0xda   :  { %314 = vsyncpa [#allocation6], 1 }
  0xdb   :  { %315 = vsyncpa [#allocation4], 1 }
  0xdc   :  { %317 = vsyncpa [#allocation4 + $0x1], 1 }

</bundles_post_ra>
